<compile_context>
chip_gen: v6e
topology: v6e:2x2x1
jax: 0.10.0
libtpu: 0.0.40
codegen_flags: <defaults>
</compile_context>

<pallas_src>
import jax
import jax.numpy as jnp
from jax.experimental import pallas as pl
from jax.experimental.pallas import tpu as pltpu


def torso_gcn_kernel(x_ref, adj_ref, pool_ref,
                     w1_ref, b1_ref, w2_ref, b2_ref, w3_ref, b3_ref,
                     wl_ref, bl_ref, out_ref):
    """One grid step == TB graphs packed together.

    x_ref:    (TB*N, IN)    f32 node features (TB graphs stacked along rows)
    adj_ref:  (TB*N, TB*N)  bf16 block-diagonal normalized adjacency (shared, resident)
    pool_ref: (TB, TB*N)    bf16 mean-pool matrix (1/N on each graph's node rows)
    w*_ref:   bf16 weights; b*_ref: f32 biases (resident every step)
    out_ref:  (TB, OUT_PAD) f32 lane-padded output block
    """
    bf16 = jnp.bfloat16
    f32 = jnp.float32
    a = adj_ref[...]                                    # (TB*N, TB*N) bf16

    def gcn_layer(h, w_ref, b_ref):
        hw = jnp.dot(h.astype(bf16), w_ref[...], preferred_element_type=f32)
        agg = jnp.dot(a, hw.astype(bf16), preferred_element_type=f32)
        return jnp.maximum(agg + b_ref[...], 0.0)

    h = gcn_layer(x_ref[...], w1_ref, b1_ref)           # (TB*N, H1)
    h = gcn_layer(h, w2_ref, b2_ref)                    # (TB*N, H2)
    h = gcn_layer(h, w3_ref, b3_ref)                    # (TB*N, H3)

    # global_mean_pool folded into a matmul: (TB, TB*N) @ (TB*N, H3) -> (TB, H3)
    pooled = jnp.dot(pool_ref[...], h.astype(bf16), preferred_element_type=f32)

    # final Linear (output width padded to OUT_PAD lanes for an unmasked store)
    out = jnp.dot(pooled.astype(bf16), wl_ref[...], preferred_element_type=f32)
    out_ref[...] = out + bl_ref[...]


def torso_gcn_forward(x, a_norm, params, dim1, dim2, *, tb=8):
    """x: (B, N, IN) f32 node features; a_norm: (N, N) f32 shared normalized adjacency."""
    B, N, IN = x.shape
    assert B % tb == 0, "batch must be divisible by the per-step graph tile tb"
    w1, b1, w2, b2, w3, b3, wl, bl = params
    H1, H2, H3 = w1.shape[1], w2.shape[1], w3.shape[1]
    OUT = wl.shape[1]
    assert OUT == dim1 * dim2

    LANE = 128
    out_pad = ((OUT + LANE - 1) // LANE) * LANE
    m = tb * N

    bf16 = jnp.bfloat16
    f32 = jnp.float32

    # Shared block-diagonal adjacency + mean-pool matrix (tiny, resident in VMEM).
    a_bd = jnp.kron(jnp.eye(tb, dtype=f32), a_norm).astype(bf16)            # (m, m)
    pool = jnp.kron(jnp.eye(tb, dtype=f32),
                    jnp.full((1, N), 1.0 / N, dtype=f32)).astype(bf16)      # (tb, m)

    # Pad the final Linear to a lane-dense output width (sliced after the call).
    wl_pad = jnp.zeros((H3, out_pad), f32).at[:, :OUT].set(wl).astype(bf16)
    bl_pad = jnp.zeros((1, out_pad), f32).at[:, :OUT].set(bl)

    x_flat = x.reshape(B * N, IN)

    full = lambda r, c: pl.BlockSpec((r, c), lambda g: (0, 0))

    out = pl.pallas_call(
        torso_gcn_kernel,
        out_shape=jax.ShapeDtypeStruct((B, out_pad), f32),
        grid=(B // tb,),
        in_specs=[
            pl.BlockSpec((m, IN), lambda g: (g, 0)),     # TB graphs of node features
            full(m, m),                                  # block-diag adjacency (shared)
            full(tb, m),                                 # pooling matrix (shared)
            full(IN, H1), full(1, H1),
            full(H1, H2), full(1, H2),
            full(H2, H3), full(1, H3),
            full(H3, out_pad), full(1, out_pad),
        ],
        out_specs=pl.BlockSpec((tb, out_pad), lambda g: (g, 0)),
        compiler_params=pltpu.CompilerParams(
            dimension_semantics=("parallel",)),          # >=2 steps -> both v7x TCs busy
    )(x_flat, a_bd, pool,
      w1.astype(bf16), b1, w2.astype(bf16), b2, w3.astype(bf16), b3,
      wl_pad, bl_pad)

    return out[:, :OUT].reshape(B, dim1, dim2)


def make_ring_adjacency(N):
    """Deterministic ring graph + self loops, GCN symmetric normalization (N, N)."""
    A = jnp.zeros((N, N), dtype=jnp.float32)
    idx = jnp.arange(N)
    A = A.at[idx, (idx + 1) % N].set(1.0)
    A = A.at[(idx + 1) % N, idx].set(1.0)
    A_hat = A + jnp.eye(N, dtype=jnp.float32)
    deg = jnp.sum(A_hat, axis=1)
    d = 1.0 / jnp.sqrt(deg)
    return A_hat * d[:, None] * d[None, :]


def init_params(key, input_dim, hidden_dim, output_dim):
    h1 = hidden_dim
    h2 = hidden_dim // 2
    h3 = hidden_dim // 4
    ks = jax.random.split(key, 8)

    def glorot(k, shape):
        scale = jnp.sqrt(2.0 / (shape[0] + shape[1]))
        return jax.random.normal(k, shape, dtype=jnp.float32) * scale

    w1 = glorot(ks[0], (input_dim, h1)); b1 = jnp.zeros((1, h1), jnp.float32)
    w2 = glorot(ks[1], (h1, h2));        b2 = jnp.zeros((1, h2), jnp.float32)
    w3 = glorot(ks[2], (h2, h3));        b3 = jnp.zeros((1, h3), jnp.float32)
    wl = glorot(ks[3], (h3, output_dim))
    bl = jax.random.normal(ks[4], (1, output_dim), dtype=jnp.float32) * 0.01
    return (w1, b1, w2, b2, w3, b3, wl, bl)


if __name__ == "__main__":
    # Module-consistent shapes: B=16 graphs (2 grid steps of TB=8), N=16 nodes/graph,
    # input_dim=8, hidden_dim=32, S=2, c=4 -> output_dim=48.
    B, N = 16, 16
    input_dim, hidden_dim = 8, 32
    S, c = 2, 4
    dim1 = 3 * S ** 2          # 12
    dim2 = c                   # 4
    output_dim = dim1 * dim2   # 48

    key = jax.random.PRNGKey(0)
    k_x, k_p = jax.random.split(key)

    x = jax.random.normal(k_x, (B, N, input_dim), dtype=jnp.float32)
    a_norm = make_ring_adjacency(N)
    params = init_params(k_p, input_dim, hidden_dim, output_dim)

    out = torso_gcn_forward(x, a_norm, params, dim1, dim2, tb=8)
    jax.block_until_ready(out)
    assert out.shape == (B, dim1, dim2)

    # Pure-JAX reference mirroring the kernel's bf16 operands / f32 accumulation.
    w1, b1, w2, b2, w3, b3, wl, bl = params
    bf = lambda t: t.astype(jnp.bfloat16)
    mm = lambda a_, b_: jnp.dot(bf(a_), bf(b_), preferred_element_type=jnp.float32)

    h = x
    for w, b in ((w1, b1), (w2, b2), (w3, b3)):
        hw = jax.vmap(lambda hg, w=w: mm(hg, w))(h)            # (B, N, H)
        agg = jax.vmap(lambda hwg: mm(a_norm, hwg))(hw)        # (B, N, H)
        h = jnp.maximum(agg + b, 0.0)
    pooled = jnp.mean(bf(h).astype(jnp.float32), axis=1)       # (B, H3)
    ref = (mm(pooled, wl) + bl).reshape(B, dim1, dim2)

    assert jnp.allclose(out, ref, atol=2e-3, rtol=2e-3), \
        float(jnp.max(jnp.abs(out - ref)))

    print("KERNEL_OK")
</pallas_src>

<mosaic_0001>
module attributes {stable_mosaic.version = 11 : i64} {
  func.func @torso_gcn_kernel(%arg0: i32, %arg1: memref<128x8xf32, #tpu.memory_space<vmem>>, %arg2: memref<128x128xbf16, #tpu.memory_space<vmem>>, %arg3: memref<8x128xbf16, #tpu.memory_space<vmem>>, %arg4: memref<8x32xbf16, #tpu.memory_space<vmem>>, %arg5: memref<1x32xf32, #tpu.memory_space<vmem>>, %arg6: memref<32x16xbf16, #tpu.memory_space<vmem>>, %arg7: memref<1x16xf32, #tpu.memory_space<vmem>>, %arg8: memref<16x8xbf16, #tpu.memory_space<vmem>>, %arg9: memref<1x8xf32, #tpu.memory_space<vmem>>, %arg10: memref<8x128xbf16, #tpu.memory_space<vmem>>, %arg11: memref<1x128xf32, #tpu.memory_space<vmem>>, %arg12: memref<8x128xf32, #tpu.memory_space<vmem>>) attributes {dimension_semantics = [#tpu.dimension_semantics<parallel>], iteration_bounds = array<i64: 2>, scalar_prefetch = 0 : i64, scratch_operands = 0 : i64, tpu.core_type = #tpu.core_type<tc>, window_params = [{transform_indices = @transform_0, window_bounds = array<i64: 128, 8>}, {pipeline_mode = #tpu.pipeline_mode<synchronous>, transform_indices = @transform_1, window_bounds = array<i64: 128, 128>}, {pipeline_mode = #tpu.pipeline_mode<synchronous>, transform_indices = @transform_2, window_bounds = array<i64: 8, 128>}, {pipeline_mode = #tpu.pipeline_mode<synchronous>, transform_indices = @transform_3, window_bounds = array<i64: 8, 32>}, {pipeline_mode = #tpu.pipeline_mode<synchronous>, transform_indices = @transform_4, window_bounds = array<i64: 1, 32>}, {pipeline_mode = #tpu.pipeline_mode<synchronous>, transform_indices = @transform_5, window_bounds = array<i64: 32, 16>}, {pipeline_mode = #tpu.pipeline_mode<synchronous>, transform_indices = @transform_6, window_bounds = array<i64: 1, 16>}, {pipeline_mode = #tpu.pipeline_mode<synchronous>, transform_indices = @transform_7, window_bounds = array<i64: 16, 8>}, {pipeline_mode = #tpu.pipeline_mode<synchronous>, transform_indices = @transform_8, window_bounds = array<i64: 1, 8>}, {pipeline_mode = #tpu.pipeline_mode<synchronous>, transform_indices = @transform_9, window_bounds = array<i64: 8, 128>}, {pipeline_mode = #tpu.pipeline_mode<synchronous>, transform_indices = @transform_10, window_bounds = array<i64: 1, 128>}, {transform_indices = @transform_11, window_bounds = array<i64: 8, 128>}]} {
    %c0 = arith.constant 0 : index
    %c0_0 = arith.constant 0 : index
    %0 = vector.load %arg2[%c0, %c0_0] : memref<128x128xbf16, #tpu.memory_space<vmem>>, vector<128x128xbf16>
    %c0_1 = arith.constant 0 : index
    %c0_2 = arith.constant 0 : index
    %1 = vector.load %arg1[%c0_1, %c0_2] : memref<128x8xf32, #tpu.memory_space<vmem>>, vector<128x8xf32>
    %2 = arith.truncf %1 : vector<128x8xf32> to vector<128x8xbf16>
    %c0_3 = arith.constant 0 : index
    %c0_4 = arith.constant 0 : index
    %3 = vector.load %arg4[%c0_3, %c0_4] : memref<8x32xbf16, #tpu.memory_space<vmem>>, vector<8x32xbf16>
    %cst = arith.constant dense<0.000000e+00> : vector<128x32xf32>
    %4 = tpu.matmul %2, %3, %cst {dimension_numbers = #tpu.dot_dimension_numbers<[1], [0], [0], [1], [0, 0, 1, 1], [], []>} : vector<128x8xbf16>, vector<8x32xbf16>, vector<128x32xf32> -> vector<128x32xf32>
    %5 = arith.truncf %4 : vector<128x32xf32> to vector<128x32xbf16>
    %cst_5 = arith.constant dense<0.000000e+00> : vector<128x32xf32>
    %6 = tpu.matmul %0, %5, %cst_5 {dimension_numbers = #tpu.dot_dimension_numbers<[1], [0], [0], [1], [0, 0, 1, 1], [], []>} : vector<128x128xbf16>, vector<128x32xbf16>, vector<128x32xf32> -> vector<128x32xf32>
    %c0_6 = arith.constant 0 : index
    %c0_7 = arith.constant 0 : index
    %7 = vector.load %arg5[%c0_6, %c0_7] : memref<1x32xf32, #tpu.memory_space<vmem>>, vector<1x32xf32>
    %8 = vector.broadcast %7 : vector<1x32xf32> to vector<128x32xf32>
    %9 = arith.addf %6, %8 : vector<128x32xf32>
    %cst_8 = arith.constant 0.000000e+00 : f32
    %10 = vector.broadcast %cst_8 : f32 to vector<128x32xf32>
    %11 = arith.maximumf %9, %10 : vector<128x32xf32>
    %12 = arith.truncf %11 : vector<128x32xf32> to vector<128x32xbf16>
    %c0_9 = arith.constant 0 : index
    %c0_10 = arith.constant 0 : index
    %13 = vector.load %arg6[%c0_9, %c0_10] : memref<32x16xbf16, #tpu.memory_space<vmem>>, vector<32x16xbf16>
    %cst_11 = arith.constant dense<0.000000e+00> : vector<128x16xf32>
    %14 = tpu.matmul %12, %13, %cst_11 {dimension_numbers = #tpu.dot_dimension_numbers<[1], [0], [0], [1], [0, 0, 1, 1], [], []>} : vector<128x32xbf16>, vector<32x16xbf16>, vector<128x16xf32> -> vector<128x16xf32>
    %15 = arith.truncf %14 : vector<128x16xf32> to vector<128x16xbf16>
    %cst_12 = arith.constant dense<0.000000e+00> : vector<128x16xf32>
    %16 = tpu.matmul %0, %15, %cst_12 {dimension_numbers = #tpu.dot_dimension_numbers<[1], [0], [0], [1], [0, 0, 1, 1], [], []>} : vector<128x128xbf16>, vector<128x16xbf16>, vector<128x16xf32> -> vector<128x16xf32>
    %c0_13 = arith.constant 0 : index
    %c0_14 = arith.constant 0 : index
    %17 = vector.load %arg7[%c0_13, %c0_14] : memref<1x16xf32, #tpu.memory_space<vmem>>, vector<1x16xf32>
    %18 = vector.broadcast %17 : vector<1x16xf32> to vector<128x16xf32>
    %19 = arith.addf %16, %18 : vector<128x16xf32>
    %cst_15 = arith.constant 0.000000e+00 : f32
    %20 = vector.broadcast %cst_15 : f32 to vector<128x16xf32>
    %21 = arith.maximumf %19, %20 : vector<128x16xf32>
    %22 = arith.truncf %21 : vector<128x16xf32> to vector<128x16xbf16>
    %c0_16 = arith.constant 0 : index
    %c0_17 = arith.constant 0 : index
    %23 = vector.load %arg8[%c0_16, %c0_17] : memref<16x8xbf16, #tpu.memory_space<vmem>>, vector<16x8xbf16>
    %cst_18 = arith.constant dense<0.000000e+00> : vector<128x8xf32>
    %24 = tpu.matmul %22, %23, %cst_18 {dimension_numbers = #tpu.dot_dimension_numbers<[1], [0], [0], [1], [0, 0, 1, 1], [], []>} : vector<128x16xbf16>, vector<16x8xbf16>, vector<128x8xf32> -> vector<128x8xf32>
    %25 = arith.truncf %24 : vector<128x8xf32> to vector<128x8xbf16>
    %cst_19 = arith.constant dense<0.000000e+00> : vector<128x8xf32>
    %26 = tpu.matmul %0, %25, %cst_19 {dimension_numbers = #tpu.dot_dimension_numbers<[1], [0], [0], [1], [0, 0, 1, 1], [], []>} : vector<128x128xbf16>, vector<128x8xbf16>, vector<128x8xf32> -> vector<128x8xf32>
    %c0_20 = arith.constant 0 : index
    %c0_21 = arith.constant 0 : index
    %27 = vector.load %arg9[%c0_20, %c0_21] : memref<1x8xf32, #tpu.memory_space<vmem>>, vector<1x8xf32>
    %28 = vector.broadcast %27 : vector<1x8xf32> to vector<128x8xf32>
    %29 = arith.addf %26, %28 : vector<128x8xf32>
    %cst_22 = arith.constant 0.000000e+00 : f32
    %30 = vector.broadcast %cst_22 : f32 to vector<128x8xf32>
    %31 = arith.maximumf %29, %30 : vector<128x8xf32>
    %c0_23 = arith.constant 0 : index
    %c0_24 = arith.constant 0 : index
    %32 = vector.load %arg3[%c0_23, %c0_24] : memref<8x128xbf16, #tpu.memory_space<vmem>>, vector<8x128xbf16>
    %33 = arith.truncf %31 : vector<128x8xf32> to vector<128x8xbf16>
    %cst_25 = arith.constant dense<0.000000e+00> : vector<8x8xf32>
    %34 = tpu.matmul %32, %33, %cst_25 {dimension_numbers = #tpu.dot_dimension_numbers<[1], [0], [0], [1], [0, 0, 1, 1], [], []>} : vector<8x128xbf16>, vector<128x8xbf16>, vector<8x8xf32> -> vector<8x8xf32>
    %35 = arith.truncf %34 : vector<8x8xf32> to vector<8x8xbf16>
    %c0_26 = arith.constant 0 : index
    %c0_27 = arith.constant 0 : index
    %36 = vector.load %arg10[%c0_26, %c0_27] : memref<8x128xbf16, #tpu.memory_space<vmem>>, vector<8x128xbf16>
    %cst_28 = arith.constant dense<0.000000e+00> : vector<8x128xf32>
    %37 = tpu.matmul %35, %36, %cst_28 {dimension_numbers = #tpu.dot_dimension_numbers<[1], [0], [0], [1], [0, 0, 1, 1], [], []>} : vector<8x8xbf16>, vector<8x128xbf16>, vector<8x128xf32> -> vector<8x128xf32>
    %c0_29 = arith.constant 0 : index
    %c0_30 = arith.constant 0 : index
    %38 = vector.load %arg11[%c0_29, %c0_30] : memref<1x128xf32, #tpu.memory_space<vmem>>, vector<1x128xf32>
    %39 = vector.broadcast %38 : vector<1x128xf32> to vector<8x128xf32>
    %40 = arith.addf %37, %39 : vector<8x128xf32>
    %c0_31 = arith.constant 0 : index
    %c0_32 = arith.constant 0 : index
    %41 = vector.load %arg12[%c0_31, %c0_32] : memref<8x128xf32, #tpu.memory_space<vmem>>, vector<8x128xf32>
    tpu.vector_store %arg12[%c0_31, %c0_32], %40 {strides = array<i32>} : memref<8x128xf32, #tpu.memory_space<vmem>>, vector<8x128xf32>,
    return
  }
  func.func @transform_0(%arg0: i32) -> (i32, i32) {
    %c0_i32 = arith.constant 0 : i32
    %c0_i32_0 = arith.constant 0 : i32
    return %arg0, %c0_i32 : i32, i32
  }
  func.func @transform_1(%arg0: i32) -> (i32, i32) {
    %c0_i32 = arith.constant 0 : i32
    %c0_i32_0 = arith.constant 0 : i32
    %c0_i32_1 = arith.constant 0 : i32
    return %c0_i32, %c0_i32_0 : i32, i32
  }
  func.func @transform_2(%arg0: i32) -> (i32, i32) {
    %c0_i32 = arith.constant 0 : i32
    %c0_i32_0 = arith.constant 0 : i32
    %c0_i32_1 = arith.constant 0 : i32
    return %c0_i32, %c0_i32_0 : i32, i32
  }
  func.func @transform_3(%arg0: i32) -> (i32, i32) {
    %c0_i32 = arith.constant 0 : i32
    %c0_i32_0 = arith.constant 0 : i32
    %c0_i32_1 = arith.constant 0 : i32
    return %c0_i32, %c0_i32_0 : i32, i32
  }
  func.func @transform_4(%arg0: i32) -> (i32, i32) {
    %c0_i32 = arith.constant 0 : i32
    %c0_i32_0 = arith.constant 0 : i32
    %c0_i32_1 = arith.constant 0 : i32
    return %c0_i32, %c0_i32_0 : i32, i32
  }
  func.func @transform_5(%arg0: i32) -> (i32, i32) {
    %c0_i32 = arith.constant 0 : i32
    %c0_i32_0 = arith.constant 0 : i32
    %c0_i32_1 = arith.constant 0 : i32
    return %c0_i32, %c0_i32_0 : i32, i32
  }
  func.func @transform_6(%arg0: i32) -> (i32, i32) {
    %c0_i32 = arith.constant 0 : i32
    %c0_i32_0 = arith.constant 0 : i32
    %c0_i32_1 = arith.constant 0 : i32
    return %c0_i32, %c0_i32_0 : i32, i32
  }
  func.func @transform_7(%arg0: i32) -> (i32, i32) {
    %c0_i32 = arith.constant 0 : i32
    %c0_i32_0 = arith.constant 0 : i32
    %c0_i32_1 = arith.constant 0 : i32
    return %c0_i32, %c0_i32_0 : i32, i32
  }
  func.func @transform_8(%arg0: i32) -> (i32, i32) {
    %c0_i32 = arith.constant 0 : i32
    %c0_i32_0 = arith.constant 0 : i32
    %c0_i32_1 = arith.constant 0 : i32
    return %c0_i32, %c0_i32_0 : i32, i32
  }
  func.func @transform_9(%arg0: i32) -> (i32, i32) {
    %c0_i32 = arith.constant 0 : i32
    %c0_i32_0 = arith.constant 0 : i32
    %c0_i32_1 = arith.constant 0 : i32
    return %c0_i32, %c0_i32_0 : i32, i32
  }
  func.func @transform_10(%arg0: i32) -> (i32, i32) {
    %c0_i32 = arith.constant 0 : i32
    %c0_i32_0 = arith.constant 0 : i32
    %c0_i32_1 = arith.constant 0 : i32
    return %c0_i32, %c0_i32_0 : i32, i32
  }
  func.func @transform_11(%arg0: i32) -> (i32, i32) {
    %c0_i32 = arith.constant 0 : i32
    %c0_i32_0 = arith.constant 0 : i32
    return %arg0, %c0_i32 : i32, i32
  }
}

</mosaic_0001>

<bundles_post_ra>
// kernel: tpu_custom_call.1
= control target key start
LH: loop header
LB: loop body
LE: loop exit
PB: predicated region body
PF: predicated region fallthrough
CT: control target
= control target key end

     0   :  { %s2194_s0 = inlined_call_operand.vmem [shape: f32[256,8], index: 0, kind: input, shape index: {}]   ;;  %s2195_s1 = inlined_call_operand.vmem [shape: bf16[128,128], index: 1, kind: input, shape index: {}]   ;;  %s2196_s2 = inlined_call_operand.vmem [shape: bf16[8,128], index: 2, kind: input, shape index: {}]   ;;  %s2197_s3 = inlined_call_operand.vmem [shape: bf16[8,32], index: 3, kind: input, shape index: {}]   ;;  %s2198_s4 = inlined_call_operand.vmem [shape: f32[1,32], index: 4, kind: input, shape index: {}]   ;;  %s2199_s5 = inlined_call_operand.vmem [shape: bf16[32,16], index: 5, kind: input, shape index: {}]   ;;  %s2200_s6 = inlined_call_operand.vmem [shape: f32[1,16], index: 6, kind: input, shape index: {}]   ;;  %s2201_s7 = inlined_call_operand.vmem [shape: bf16[16,8], index: 7, kind: input, shape index: {}]   ;;  %s2202_s8 = inlined_call_operand.vmem [shape: f32[1,8], index: 8, kind: input, shape index: {}]   ;;  %s2203_s9 = inlined_call_operand.vmem [shape: bf16[8,128], index: 9, kind: input, shape index: {}]   ;;  %s2204_s10 = inlined_call_operand.vmem [shape: f32[1,128], index: 10, kind: input, shape index: {}]   ;;  %s2205_s11 = inlined_call_operand.hbm [shape: f32[16,128], index: 11, kind: output, shape index: {}]  }
   0x1   :  { %2206 = sst [smem:[#allocation5_spill]] %s2194_s0 }
   0x2   :  { %16 = vsyncpa [#allocation3], 0 }
   0x3   :  { %18 = vsyncpa [#allocation3 + $0x1], 0  ;;  %s1943_s17 = smov 0   ;;  %s1945_s18 = smov 0  }
   0x4   :  { %s1947_s19 = smov 0   ;;  %s1949_s20 = smov 0  }
   0x5 LB: > { %s1964_s21 = sadd.s32 4294967295, %s1878_s20   ;;  %s1449_s22 = sadd.s32 4294967294, %s1878_s20   ;;  %s1878_s20 = sphi %s1949_s20, %s2213_s20   ;;  %s1874_s19 = sphi %s1947_s19, %s2212_s19   ;;  %s1870_s18 = sphi %s1945_s18, %s2211_s18   ;;  %s1866_s17 = sphi %s1943_s17, %s2210_s17  }
   0x6   : > { %s1968_s23 = sadd.s32 1, %s1878_s20   ;;  %s267_s24 = sadd.s32 1, %s1874_s19 }
   0x7   : > { %s264_s25 = ssub.s32 %s1878_s20, %s1968_s23  ;;  %p277_p0 = scmp.ne.s32.totalorder %s1874_s19, %s1870_s18 }
   0x8   : > { %p265_p1 = scmp.eq.s32.totalorder %s264_s25, 0  ;;  %p278_p2 = scmp.eq.s32.totalorder %s1964_s21, 1 }
   0x9   : > { %p283_p3 = scmp.ne.s32.totalorder %s1870_s18, %s1866_s17  ;;  %p284_p4 = scmp.eq.s32.totalorder %s1449_s22, 1 }
   0xa   : > { %s1979_s26 = scalar_select %p265_p1, %s1874_s19, %s267_s24  }
   0xb   : > { %p1981_p5 = por %p278_p2, %p277_p0  ;;  %p1985_p6 = por %p284_p4, %p283_p3 }
   0xc   : > { %p1452_p7 = scmp.ge.s32.totalorder %s1878_s20, 1  ;;  %p341_p8 = scmp.lt.s32.totalorder %s1878_s20, 3 }
   0xe   : > { %p342_p9 = pnand %p1452_p7, %p341_p8 }
   0xf   : > { %s1454_s12 = sshll.u32 (!%p342_p9), %s1964_s21, 4  ;;  %s2209_s0 = sld [smem:[#allocation5_spill]] (!%p342_p9) }
  0x10   : > { %345 = sbr.rel (%p342_p9) target bundleno = 1867 (0x74b), region = 64  ;;  %p382_p10 = scmp.lt.s32.totalorder (!%p342_p9), %s1454_s12, 31 }
  0x11   : > { %s378_s25 = sand.u32 (!%p342_p9), 1, %s1870_s18  }
  0x12   : > { %s1453_s29 = sshll.u32 (!%p342_p9), %s378_s25, 3  ;;  %s1377_s30 = scalar_lea.sflag (!%p342_p9), [#allocation3], %s378_s25 }
  0x13   : > { %s380_s14 = scalar_lea.vmem (!%p342_p9), [#allocation2], %s1453_s29 }
  0x14   : > { %s1390_s15 = sshll.u32 (!%p342_p9), %s380_s14, 4  ;;  %s2155_s15 = int_to_ptr.vmem [resolvable:$true] %s1390_s15 }
  0x15   : > { %v428_v0 = vld [vmem:[%s2197_s3] sm:$0xf]  ;;  %vm454_vm0 = vcmask 1043456   ;;  %s2215_s12 = smov (!%p382_p10, %s1454_s12), 31  ;;  %vm429_vm1 = vcmask 64512   ;;  %v1815_v27 = vld [vmem:[%s2199_s5 + $0x8] sm:$0xff]  }
  0x16   : > { %1765 = vmatprep.subr.msk.bf16.mxu0 %vm454_vm0, %v428_v0  ;;  %v456_v1 = vsel %vm454_vm0, %v428_v0, 0  ;;  %s1455_s13 = sshll.u32 %s2215_s12, 3  ;;  %v2029_v26 = vld [vmem:[%s2195_s1] sm:$0xff]   ;;  %v2041_v53 = vld [vmem:[%s2195_s1 + $0x8] sm:$0xff]   ;;  %v2046_v54 = vld [vmem:[%s2195_s1 + $0x10] sm:$0xff]   ;;  %vm755_vm2 = vcmask 261120  }
  0x17   : > { %1588 = vmatpush3.bf16.msra.mxu0 %v456_v1  ;;  %s2000_s16 = scalar_lea.vmem %s2209_s0, %s1455_s13  ;;  %1621 = vmatprep.mubr.bf16.mxu1 %v2029_v26  ;;  %v1816_v28 = vld [vmem:[%s2199_s5] sm:$0xff]   ;;  %v2053_v55 = vld [vmem:[%s2195_s1 + $0x18] sm:$0xff]   ;;  %v2065_v57 = vld [vmem:[%s2195_s1 + $0x28] sm:$0xff]   ;;  %vm1021_vm3 = vcmask 130048   ;;  %vm1881_vm4 = vmmov 0   ;;  %s1497_s13 = sshll.u32 %s1964_s21, 7 }
  0x18   : > { %v404_v2 = vld [vmem:[%s2000_s16] sm:$0xff]  ;;  %v405_v3 = vld [vmem:[%s2000_s16 + $0x8] sm:$0xff]  ;;  %v406_v4 = vld [vmem:[%s2000_s16 + $0x10] sm:$0xff]  ;;  %1637 = vmatprep.subr.bf16.mxu0 %v1815_v27  ;;  %s2153_s24 = scalar_lea.hbm %s2205_s11, %s1497_s13  ;;  %s1818_s12 = scalar_lea.vmem %s2155_s15, 128 }
  0x19   : > { %v420_v5 = vpack.c.bf16 %v405_v3, %v404_v2  ;;  %v407_v6 = vld [vmem:[%s2000_s16 + $0x18] sm:$0xff]  ;;  %v408_v7 = vld [vmem:[%s2000_s16 + $0x20] sm:$0xff]  ;;  %v409_v8 = vld [vmem:[%s2000_s16 + $0x28] sm:$0xff]  ;;  %p1819_p11 = scmp.ne.s32.totalorder %s2155_s15, %s1818_s12  ;;  %s1882_s21 = smov [#allocation2]  }
  0x1a   : > { %v421_v9 = vpack.c.bf16 %v407_v6, %v406_v4  ;;  %v422_v10 = vpack.c.bf16 %v409_v8, %v408_v7  ;;  %v410_v11 = vld [vmem:[%s2000_s16 + $0x30] sm:$0xff]  ;;  %v411_v12 = vld [vmem:[%s2000_s16 + $0x38] sm:$0xff]  ;;  %v412_v13 = vld [vmem:[%s2000_s16 + $0x40] sm:$0xff]  ;;  %s1822_s29 = sshll.u32 %s1882_s21, 4  ;;  %s1823_s29 = int_to_ptr.vmem [resolvable:$false] %s1822_s29 }
  0x1b   : > { %1589 = vmatprep.mubr.msk.bf16.mxu0 %vm429_vm1, %v420_v5  ;;  %v413_v14 = vld [vmem:[%s2000_s16 + $0x48] sm:$0xff]  ;;  %v423_v15 = vpack.c.bf16 %v411_v12, %v410_v11  ;;  %v414_v17 = vld [vmem:[%s2000_s16 + $0x50] sm:$0xff]  ;;  %v415_v18 = vld [vmem:[%s2000_s16 + $0x58] sm:$0xff]  ;;  %p1820_p12 = pnand %p1819_p11, %p1981_p5  ;;  %p1825_p0 = scmp.lt.s32.totalorder %s2155_s15, %s1823_s29 }
  0x1c   : > { %1590 = vmatmul.mubr.msk.bf16.vlgmr.msra.gmra.mxu0 %vm429_vm1, %v421_v9  ;;  %v424_v16 = vpack.c.bf16 %v413_v14, %v412_v13  ;;  %v416_v19 = vld [vmem:[%s2000_s16 + $0x60] sm:$0xff]  ;;  %v417_v20 = vld [vmem:[%s2000_s16 + $0x68] sm:$0xff]  ;;  %v425_v21 = vpack.c.bf16 %v415_v18, %v414_v17  ;;  %v418_v23 = vld [vmem:[%s2000_s16 + $0x70] sm:$0xff] }
  0x1d   : > { %1593 = vmatprep.mubr.msk.bf16.mxu0 %vm429_vm1, %v422_v10  ;;  %v426_v22 = vpack.c.bf16 %v417_v20, %v416_v19  ;;  %v419_v24 = vld [vmem:[%s2000_s16 + $0x78] sm:$0xff]  ;;  %1638 = vmatpush3.bf16.msra.mxu0 %v1815_v27  ;;  %v2058_v56 = vld [vmem:[%s2195_s1 + $0x20] sm:$0xff]   ;;  %v2070_v58 = vld [vmem:[%s2195_s1 + $0x30] sm:$0xff]   ;;  %p1821_p13 = pneg %p1820_p12  ;;  %s1824_s16 = scalar_lea.vmem %s1823_s29, 256 }
  0x1e   : > { %v427_v25 = vpack.c.bf16 %v419_v24, %v418_v23  ;;  %1639 = vmatprep.subr.bf16.mxu0 %v1816_v28  ;;  %v2077_v59 = vld [vmem:[%s2195_s1 + $0x38] sm:$0xff]   ;;  %v1464_v62 = vld [vmem:[%s2198_s4] ss:$0 sm:$0xff]  ;;  %p1826_p1 = scmp.lt.s32.totalorder %s1824_s16, %s1818_s12 }
  0x20   : > { %p1827_p2 = por %p1826_p1, %p1825_p0 }
  0x21   : > { %1640 = vmatpush3.bf16.msra.mxu0 %v1816_v28 }
  0x22   : > { %p1828_p3 = pnand %p1827_p2, %p1821_p13 }
  0x24   : > { %1594 = vmatmul.mubr.msk.bf16.gmra.mxu0 %vm429_vm1, %v423_v15 }
  0x25   : > { %1597 = vmatprep.mubr.msk.bf16.mxu0 %vm429_vm1, %v424_v16 }
  0x2c   : > { %1598 = vmatmul.mubr.msk.bf16.gmra.mxu0 %vm429_vm1, %v425_v21 }
  0x2d   : > { %1601 = vmatprep.mubr.msk.bf16.mxu0 %vm429_vm1, %v426_v22 }
  0x34   : > { %1602 = vmatmul.mubr.msk.bf16.gmra.mxu0 %vm429_vm1, %v427_v25 }
  0xdc   : > { %v1591_v29 = vpop.f32.mrf.mxu0 }
  0xde   : > { %v492_v30 = vpop.f32.mrf.mxu0 }
  0xe0   : > { %v1592_v31 = vpop.f32.mrf.mxu0 }
  0xe1   : > { %v556_v51 = vpack.c.bf16 %v1592_v31, %v1591_v29 }
  0xe2   : > { %v495_v32 = vpop.f32.mrf.mxu0 }
  0xe3   : > { %v555_v52 = vpack.c.bf16 %v495_v32, %v492_v30 }
  0xe4   : > { %v1595_v33 = vpop.f32.mrf.mxu0 }
  0xe6   : > { %v508_v34 = vpop.f32.mrf.mxu0 }
  0xe8   : > { %v1596_v35 = vpop.f32.mrf.mxu0 }
  0xe9   : > { %v558_v49 = vpack.c.bf16 %v1596_v35, %v1595_v33 }
  0xea   : > { %v511_v36 = vpop.f32.mrf.mxu0 }
  0xeb   : > { %v557_v50 = vpack.c.bf16 %v511_v36, %v508_v34 }
  0xec   : > { %v1599_v37 = vpop.f32.mrf.mxu0 }
  0xee   : > { %v524_v38 = vpop.f32.mrf.mxu0 }
  0xf0   : > { %v1600_v39 = vpop.f32.mrf.mxu0 }
  0xf1   : > { %v560_v47 = vpack.c.bf16 %v1600_v39, %v1599_v37 }
  0xf2   : > { %v527_v40 = vpop.f32.mrf.mxu0 }
  0xf3   : > { %v559_v48 = vpack.c.bf16 %v527_v40, %v524_v38 }
  0xf4   : > { %v1603_v41 = vpop.f32.mrf.mxu0 }
  0xf6   : > { %v540_v42 = vpop.f32.mrf.mxu0 }
  0xf8   : > { %v1604_v43 = vpop.f32.mrf.mxu0 }
  0xf9   : > { %v562_v44 = vpack.c.bf16 %v1604_v43, %v1603_v41 }
  0xfa   : > { %v543_v45 = vpop.f32.mrf.mxu0 }
  0xfb   : > { %v561_v46 = vpack.c.bf16 %v543_v45, %v540_v42  ;;  %1605 = vmatprep.subr.bf16.mxu1 %v562_v44 }
  0xfc   : > { %1606 = vmatpush3.bf16.msra.mxu1 %v562_v44 }
  0xfd   : > { %1607 = vmatprep.subr.bf16.mxu1 %v561_v46 }
 0x100   : > { %1608 = vmatpush3.bf16.msra.mxu1 %v561_v46 }
 0x101   : > { %1609 = vmatprep.subr.bf16.mxu1 %v560_v47 }
 0x104   : > { %1610 = vmatpush3.bf16.msra.mxu1 %v560_v47 }
 0x105   : > { %1611 = vmatprep.subr.bf16.mxu1 %v559_v48 }
 0x108   : > { %1612 = vmatpush3.bf16.msra.mxu1 %v559_v48 }
 0x109   : > { %1613 = vmatprep.subr.bf16.mxu1 %v558_v49 }
 0x10c   : > { %1614 = vmatpush3.bf16.msra.mxu1 %v558_v49 }
 0x10d   : > { %1615 = vmatprep.subr.bf16.mxu1 %v557_v50 }
 0x110   : > { %1616 = vmatpush3.bf16.msra.mxu1 %v557_v50 }
 0x111   : > { %1617 = vmatprep.subr.bf16.mxu1 %v556_v51 }
 0x114   : > { %1618 = vmatpush3.bf16.msra.mxu1 %v556_v51 }
 0x115   : > { %1619 = vmatprep.subr.bf16.mxu1 %v555_v52 }
 0x118   : > { %1620 = vmatpush3.bf16.msra.mxu1 %v555_v52 }
 0x11b   : > { %1622 = vmatmul.mubr.bf16.vlgmr.msra.gmra.mxu1 %v2041_v53 }
 0x11c   : > { %1625 = vmatprep.mubr.bf16.mxu1 %v2046_v54 }
 0x123   : > { %1626 = vmatmul.mubr.bf16.gmra.mxu1 %v2053_v55 }
 0x124   : > { %1629 = vmatprep.mubr.bf16.mxu1 %v2058_v56 }
 0x12b   : > { %1630 = vmatmul.mubr.bf16.gmra.mxu1 %v2065_v57 }
 0x12c   : > { %1633 = vmatprep.mubr.bf16.mxu1 %v2070_v58 }
 0x133   : > { %1634 = vmatmul.mubr.bf16.gmra.mxu1 %v2077_v59 }
 0x134   : > { %1673 = vmatprep.mubr.bf16.mxu1 %v2029_v26 }
 0x1db   : > { %v1623_v60 = vpop.f32.mrf.mxu1 }
 0x1dc   : > { %v661_v2 = vadd.f32 %v1623_v60, %v1464_v62 }
 0x1dd   : > { %v652_v61 = vpop.f32.mrf.mxu1 }
 0x1de   : > { %v653_v0 = vadd.f32 %v1464_v62, %v652_v61  ;;  %v717_v9 = vmax.f32 %v661_v2, 0.0  ;;  %v1817_v61 = vld [vmem:[%s2201_s7] sm:$0xff]  }
 0x1df   : > { %v1624_v63 = vpop.f32.mrf.mxu1  ;;  %1689 = vmatprep.subr.bf16.mxu0 %v1817_v61 }
 0x1e0   : > { %v664_v1 = vadd.f32 %v1624_v63, %v1464_v62  ;;  %v715_v7 = vmax.f32 %v653_v0, 0.0 }
 0x1e1   : > { %v655_v3 = vpop.f32.mrf.mxu1 }
 0x1e2   : > { %v656_v4 = vadd.f32 %v1464_v62, %v655_v3  ;;  %v718_v5 = vmax.f32 %v664_v1, 0.0 }
 0x1e3   : > { %v1627_v6 = vpop.f32.mrf.mxu1 }
 0x1e4   : > { %v716_v8 = vmax.f32 %v656_v4, 0.0  ;;  %v732_v12 = vpack.c.bf16 %v718_v5, %v717_v9  ;;  %v677_v16 = vadd.f32 %v1627_v6, %v1464_v62 }
 0x1e5   : > { %v668_v10 = vpop.f32.mrf.mxu1 }
 0x1e6   : > { %v731_v11 = vpack.c.bf16 %v716_v8, %v715_v7  ;;  %v669_v14 = vadd.f32 %v1464_v62, %v668_v10  ;;  %v721_v23 = vmax.f32 %v677_v16, 0.0 }
 0x1e7   : > { %v1628_v13 = vpop.f32.mrf.mxu1 }
 0x1e8   : > { %v680_v15 = vadd.f32 %v1628_v13, %v1464_v62  ;;  %1641 = vmatprep.mubr.msk.bf16.mxu0 %vm755_vm2, %v731_v11  ;;  %v719_v21 = vmax.f32 %v669_v14, 0.0 }
 0x1e9   : > { %v671_v17 = vpop.f32.mrf.mxu1  ;;  %1642 = vmatmul.mubr.msk.bf16.vlgmr.msra.gmra.mxu0 %vm755_vm2, %v732_v12 }
 0x1ea   : > { %v672_v18 = vadd.f32 %v1464_v62, %v671_v17  ;;  %v722_v19 = vmax.f32 %v680_v15, 0.0  ;;  %1690 = vmatpush3.bf16.msra.mxu0 %v1817_v61 }
 0x1eb   : > { %v1631_v20 = vpop.f32.mrf.mxu1 }
 0x1ec   : > { %v720_v22 = vmax.f32 %v672_v18, 0.0  ;;  %v734_v27 = vpack.c.bf16 %v722_v19, %v721_v23  ;;  %v693_v31 = vadd.f32 %v1631_v20, %v1464_v62 }
 0x1ed   : > { %v684_v24 = vpop.f32.mrf.mxu1 }
 0x1ee   : > { %v733_v25 = vpack.c.bf16 %v720_v22, %v719_v21  ;;  %v685_v29 = vadd.f32 %v1464_v62, %v684_v24  ;;  %v725_v38 = vmax.f32 %v693_v31, 0.0  ;;  %v1483_v24 = vld [vmem:[%s2200_s6] ss:$0 sm:$0xff] }
 0x1ef   : > { %v1632_v28 = vpop.f32.mrf.mxu1 }
 0x1f0   : > { %v696_v30 = vadd.f32 %v1632_v28, %v1464_v62  ;;  %1645 = vmatprep.mubr.msk.bf16.mxu0 %vm755_vm2, %v733_v25  ;;  %v723_v36 = vmax.f32 %v685_v29, 0.0 }
 0x1f1   : > { %v687_v32 = vpop.f32.mrf.mxu1  ;;  %1646 = vmatmul.mubr.msk.bf16.gmra.mxu0 %vm755_vm2, %v734_v27 }
 0x1f2   : > { %v688_v33 = vadd.f32 %v1464_v62, %v687_v32  ;;  %v726_v34 = vmax.f32 %v696_v30, 0.0 }
 0x1f3   : > { %v1635_v35 = vpop.f32.mrf.mxu1 }
 0x1f4   : > { %v724_v37 = vmax.f32 %v688_v33, 0.0  ;;  %v736_v41 = vpack.c.bf16 %v726_v34, %v725_v38  ;;  %v709_v45 = vadd.f32 %v1635_v35, %v1464_v62 }
 0x1f5   : > { %v700_v39 = vpop.f32.mrf.mxu1 }
 0x1f6   : > { %v735_v40 = vpack.c.bf16 %v724_v37, %v723_v36  ;;  %v701_v43 = vadd.f32 %v1464_v62, %v700_v39  ;;  %v729_v51 = vmax.f32 %v709_v45, 0.0 }
 0x1f7   : > { %v1636_v42 = vpop.f32.mrf.mxu1 }
 0x1f8   : > { %v712_v44 = vadd.f32 %v1636_v42, %v1464_v62  ;;  %1649 = vmatprep.mubr.msk.bf16.mxu0 %vm755_vm2, %v735_v40  ;;  %v727_v49 = vmax.f32 %v701_v43, 0.0 }
 0x1f9   : > { %v703_v46 = vpop.f32.mrf.mxu1  ;;  %1650 = vmatmul.mubr.msk.bf16.gmra.mxu0 %vm755_vm2, %v736_v41 }
 0x1fa   : > { %v704_v47 = vadd.f32 %v1464_v62, %v703_v46  ;;  %v730_v48 = vmax.f32 %v712_v44, 0.0 }
 0x1fc   : > { %v728_v50 = vmax.f32 %v704_v47, 0.0  ;;  %v738_v60 = vpack.c.bf16 %v730_v48, %v729_v51 }
 0x1fe   : > { %v737_v52 = vpack.c.bf16 %v728_v50, %v727_v49 }
 0x200   : > { %1653 = vmatprep.mubr.msk.bf16.mxu0 %vm755_vm2, %v737_v52 }
 0x201   : > { %1654 = vmatmul.mubr.msk.bf16.gmra.mxu0 %vm755_vm2, %v738_v60 }
 0x2a9   : > { %v1643_v63 = vpop.f32.mrf.mxu0 }
 0x2ab   : > { %v814_v0 = vpop.f32.mrf.mxu0 }
 0x2ad   : > { %v1644_v1 = vpop.f32.mrf.mxu0 }
 0x2ae   : > { %v878_v20 = vpack.c.bf16 %v1644_v1, %v1643_v63 }
 0x2af   : > { %v817_v62 = vpop.f32.mrf.mxu0 }
 0x2b0   : > { %v877_v21 = vpack.c.bf16 %v817_v62, %v814_v0 }
 0x2b1   : > { %v1647_v2 = vpop.f32.mrf.mxu0 }
 0x2b3   : > { %v830_v3 = vpop.f32.mrf.mxu0 }
 0x2b5   : > { %v1648_v4 = vpop.f32.mrf.mxu0 }
 0x2b6   : > { %v880_v18 = vpack.c.bf16 %v1648_v4, %v1647_v2 }
 0x2b7   : > { %v833_v5 = vpop.f32.mrf.mxu0 }
 0x2b8   : > { %v879_v19 = vpack.c.bf16 %v833_v5, %v830_v3 }
 0x2b9   : > { %v1651_v6 = vpop.f32.mrf.mxu0 }
 0x2bb   : > { %v846_v7 = vpop.f32.mrf.mxu0 }
 0x2bd   : > { %v1652_v8 = vpop.f32.mrf.mxu0 }
 0x2be   : > { %v882_v16 = vpack.c.bf16 %v1652_v8, %v1651_v6 }
 0x2bf   : > { %v849_v9 = vpop.f32.mrf.mxu0 }
 0x2c0   : > { %v881_v17 = vpack.c.bf16 %v849_v9, %v846_v7 }
 0x2c1   : > { %v1655_v10 = vpop.f32.mrf.mxu0 }
 0x2c3   : > { %v862_v11 = vpop.f32.mrf.mxu0 }
 0x2c5   : > { %v1656_v12 = vpop.f32.mrf.mxu0 }
 0x2c6   : > { %v884_v13 = vpack.c.bf16 %v1656_v12, %v1655_v10 }
 0x2c7   : > { %v865_v14 = vpop.f32.mrf.mxu0 }
 0x2c8   : > { %v883_v15 = vpack.c.bf16 %v865_v14, %v862_v11  ;;  %1657 = vmatprep.subr.bf16.mxu1 %v884_v13 }
 0x2c9   : > { %1658 = vmatpush3.bf16.msra.mxu1 %v884_v13 }
 0x2ca   : > { %1659 = vmatprep.subr.bf16.mxu1 %v883_v15 }
 0x2cd   : > { %1660 = vmatpush3.bf16.msra.mxu1 %v883_v15 }
 0x2ce   : > { %1661 = vmatprep.subr.bf16.mxu1 %v882_v16 }
 0x2d1   : > { %1662 = vmatpush3.bf16.msra.mxu1 %v882_v16 }
 0x2d2   : > { %1663 = vmatprep.subr.bf16.mxu1 %v881_v17 }
 0x2d5   : > { %1664 = vmatpush3.bf16.msra.mxu1 %v881_v17 }
 0x2d6   : > { %1665 = vmatprep.subr.bf16.mxu1 %v880_v18 }
 0x2d9   : > { %1666 = vmatpush3.bf16.msra.mxu1 %v880_v18 }
 0x2da   : > { %1667 = vmatprep.subr.bf16.mxu1 %v879_v19 }
 0x2dd   : > { %1668 = vmatpush3.bf16.msra.mxu1 %v879_v19 }
 0x2de   : > { %1669 = vmatprep.subr.bf16.mxu1 %v878_v20 }
 0x2e1   : > { %1670 = vmatpush3.bf16.msra.mxu1 %v878_v20 }
 0x2e2   : > { %1671 = vmatprep.subr.bf16.mxu1 %v877_v21 }
 0x2e5   : > { %1672 = vmatpush3.bf16.msra.mxu1 %v877_v21 }
 0x2e8   : > { %1674 = vmatmul.mubr.bf16.vlgmr.msra.gmra.mxu1 %v2041_v53 }
 0x2e9   : > { %1677 = vmatprep.mubr.bf16.mxu1 %v2046_v54 }
 0x2f0   : > { %1678 = vmatmul.mubr.bf16.gmra.mxu1 %v2053_v55 }
 0x2f1   : > { %1681 = vmatprep.mubr.bf16.mxu1 %v2058_v56 }
 0x2f8   : > { %1682 = vmatmul.mubr.bf16.gmra.mxu1 %v2065_v57 }
 0x2f9   : > { %1685 = vmatprep.mubr.bf16.mxu1 %v2070_v58 }
 0x300   : > { %1686 = vmatmul.mubr.bf16.gmra.mxu1 %v2077_v59 }
 0x301   : > { %1723 = vmatprep.mubr.bf16.mxu1 %v2029_v26 }
 0x3a8   : > { %v1675_v22 = vpop.f32.mrf.mxu1 }
 0x3a9   : > { %v935_v29 = vadd.f32 %v1675_v22, %v1483_v24 }
 0x3aa   : > { %v926_v23 = vpop.f32.mrf.mxu1 }
 0x3ab   : > { %v927_v27 = vadd.f32 %v1483_v24, %v926_v23  ;;  %v991_v36 = vmax.f32 %v935_v29, 0.0 }
 0x3ac   : > { %v1676_v25 = vpop.f32.mrf.mxu1 }
 0x3ad   : > { %v938_v28 = vadd.f32 %v1676_v25, %v1483_v24  ;;  %v989_v34 = vmax.f32 %v927_v27, 0.0 }
 0x3ae   : > { %v929_v30 = vpop.f32.mrf.mxu1 }
 0x3af   : > { %v930_v31 = vadd.f32 %v1483_v24, %v929_v30  ;;  %v992_v32 = vmax.f32 %v938_v28, 0.0 }
 0x3b0   : > { %v1679_v33 = vpop.f32.mrf.mxu1 }
 0x3b1   : > { %v990_v35 = vmax.f32 %v930_v31, 0.0  ;;  %v1006_v38 = vpack.c.bf16 %v992_v32, %v991_v36  ;;  %v951_v42 = vadd.f32 %v1679_v33, %v1483_v24 }
 0x3b2   : > { %v942_v37 = vpop.f32.mrf.mxu1 }
 0x3b3   : > { %v1005_v26 = vpack.c.bf16 %v990_v35, %v989_v34  ;;  %v943_v40 = vadd.f32 %v1483_v24, %v942_v37  ;;  %v995_v49 = vmax.f32 %v951_v42, 0.0 }
 0x3b4   : > { %v1680_v39 = vpop.f32.mrf.mxu1 }
 0x3b5   : > { %v954_v41 = vadd.f32 %v1680_v39, %v1483_v24  ;;  %1691 = vmatprep.mubr.msk.bf16.mxu0 %vm1021_vm3, %v1005_v26  ;;  %v993_v47 = vmax.f32 %v943_v40, 0.0 }
 0x3b6   : > { %v945_v43 = vpop.f32.mrf.mxu1  ;;  %1692 = vmatmul.mubr.msk.bf16.vlgmr.msra.gmra.mxu0 %vm1021_vm3, %v1006_v38 }
 0x3b7   : > { %v946_v44 = vadd.f32 %v1483_v24, %v945_v43  ;;  %v996_v45 = vmax.f32 %v954_v41, 0.0 }
 0x3b8   : > { %v1683_v46 = vpop.f32.mrf.mxu1 }
 0x3b9   : > { %v994_v48 = vmax.f32 %v946_v44, 0.0  ;;  %v1008_v52 = vpack.c.bf16 %v996_v45, %v995_v49  ;;  %v967_v0 = vadd.f32 %v1683_v46, %v1483_v24  ;;  %v1880_v46 = vmov 0.0  }
 0x3ba   : > { %v958_v50 = vpop.f32.mrf.mxu1  ;;  %1739 = vmatprep.subr.bf16.mxu0 %v1880_v46 }
 0x3bb   : > { %v1007_v51 = vpack.c.bf16 %v994_v48, %v993_v47  ;;  %v959_v61 = vadd.f32 %v1483_v24, %v958_v50  ;;  %v999_v6 = vmax.f32 %v967_v0, 0.0 }
 0x3bc   : > { %v1684_v60 = vpop.f32.mrf.mxu1 }
 0x3bd   : > { %v970_v63 = vadd.f32 %v1684_v60, %v1483_v24  ;;  %1695 = vmatprep.mubr.msk.bf16.mxu0 %vm1021_vm3, %v1007_v51  ;;  %v997_v4 = vmax.f32 %v959_v61, 0.0  ;;  %v1493_v60 = vld [vmem:[%s2202_s8] ss:$0 sm:$0xff] }
 0x3be   : > { %v961_v1 = vpop.f32.mrf.mxu1  ;;  %1696 = vmatmul.mubr.msk.bf16.gmra.mxu0 %vm1021_vm3, %v1008_v52 }
 0x3bf   : > { %v962_v62 = vadd.f32 %v1483_v24, %v961_v1  ;;  %v1000_v2 = vmax.f32 %v970_v63, 0.0 }
 0x3c0   : > { %v1687_v3 = vpop.f32.mrf.mxu1 }
 0x3c1   : > { %v998_v5 = vmax.f32 %v962_v62, 0.0  ;;  %v1010_v9 = vpack.c.bf16 %v1000_v2, %v999_v6  ;;  %v983_v13 = vadd.f32 %v1687_v3, %v1483_v24 }
 0x3c2   : > { %v974_v7 = vpop.f32.mrf.mxu1 }
 0x3c3   : > { %v1009_v8 = vpack.c.bf16 %v998_v5, %v997_v4  ;;  %v975_v11 = vadd.f32 %v1483_v24, %v974_v7  ;;  %v1003_v19 = vmax.f32 %v983_v13, 0.0 }
 0x3c4   : > { %v1688_v10 = vpop.f32.mrf.mxu1 }
 0x3c5   : > { %v986_v12 = vadd.f32 %v1688_v10, %v1483_v24  ;;  %1699 = vmatprep.mubr.msk.bf16.mxu0 %vm1021_vm3, %v1009_v8  ;;  %v1001_v17 = vmax.f32 %v975_v11, 0.0 }
 0x3c6   : > { %v977_v14 = vpop.f32.mrf.mxu1  ;;  %1700 = vmatmul.mubr.msk.bf16.gmra.mxu0 %vm1021_vm3, %v1010_v9 }
 0x3c7   : > { %v978_v15 = vadd.f32 %v1483_v24, %v977_v14  ;;  %v1004_v16 = vmax.f32 %v986_v12, 0.0 }
 0x3c9   : > { %v1002_v18 = vmax.f32 %v978_v15, 0.0  ;;  %v1012_v21 = vpack.c.bf16 %v1004_v16, %v1003_v19 }
 0x3cb   : > { %v1011_v20 = vpack.c.bf16 %v1002_v18, %v1001_v17 }
 0x3cd   : > { %1703 = vmatprep.mubr.msk.bf16.mxu0 %vm1021_vm3, %v1011_v20 }
 0x3ce   : > { %1704 = vmatmul.mubr.msk.bf16.gmra.mxu0 %vm1021_vm3, %v1012_v21 }
 0x3cf   : > { %1755 = vmatprep.mubr.msk.bf16.mxu0 %vm1881_vm4, %v1880_v46 }
 0x476   : > { %v1693_v22 = vpop.f32.mrf.mxu0 }
 0x478   : > { %v1080_v23 = vpop.f32.mrf.mxu0 }
 0x47a   : > { %v1694_v25 = vpop.f32.mrf.mxu0 }
 0x47b   : > { %v1144_v44 = vpack.c.bf16 %v1694_v25, %v1693_v22 }
 0x47c   : > { %v1083_v27 = vpop.f32.mrf.mxu0 }
 0x47d   : > { %v1143_v45 = vpack.c.bf16 %v1083_v27, %v1080_v23 }
 0x47e   : > { %v1697_v28 = vpop.f32.mrf.mxu0 }
 0x480   : > { %v1096_v29 = vpop.f32.mrf.mxu0 }
 0x482   : > { %v1698_v30 = vpop.f32.mrf.mxu0 }
 0x483   : > { %v1146_v42 = vpack.c.bf16 %v1698_v30, %v1697_v28 }
 0x484   : > { %v1099_v31 = vpop.f32.mrf.mxu0 }
 0x485   : > { %v1145_v43 = vpack.c.bf16 %v1099_v31, %v1096_v29 }
 0x486   : > { %v1701_v32 = vpop.f32.mrf.mxu0 }
 0x488   : > { %v1112_v24 = vpop.f32.mrf.mxu0 }
 0x48a   : > { %v1702_v33 = vpop.f32.mrf.mxu0 }
 0x48b   : > { %v1148_v40 = vpack.c.bf16 %v1702_v33, %v1701_v32 }
 0x48c   : > { %v1115_v34 = vpop.f32.mrf.mxu0 }
 0x48d   : > { %v1147_v41 = vpack.c.bf16 %v1115_v34, %v1112_v24 }
 0x48e   : > { %v1705_v35 = vpop.f32.mrf.mxu0 }
 0x490   : > { %v1128_v36 = vpop.f32.mrf.mxu0 }
 0x492   : > { %v1706_v37 = vpop.f32.mrf.mxu0 }
 0x493   : > { %v1150_v26 = vpack.c.bf16 %v1706_v37, %v1705_v35 }
 0x494   : > { %v1131_v38 = vpop.f32.mrf.mxu0 }
 0x495   : > { %v1149_v39 = vpack.c.bf16 %v1131_v38, %v1128_v36  ;;  %1707 = vmatprep.subr.bf16.mxu1 %v1150_v26 }
 0x496   : > { %1708 = vmatpush3.bf16.msra.mxu1 %v1150_v26 }
 0x497   : > { %1709 = vmatprep.subr.bf16.mxu1 %v1149_v39 }
 0x49a   : > { %1710 = vmatpush3.bf16.msra.mxu1 %v1149_v39 }
 0x49b   : > { %1711 = vmatprep.subr.bf16.mxu1 %v1148_v40 }
 0x49e   : > { %1712 = vmatpush3.bf16.msra.mxu1 %v1148_v40  ;;  %v1321_v40 = vld [vmem:[%s2203_s9] sm:$0xf] }
 0x49f   : > { %1713 = vmatprep.subr.bf16.mxu1 %v1147_v41 }
 0x4a2   : > { %1714 = vmatpush3.bf16.msra.mxu1 %v1147_v41  ;;  %v1271_v41 = vld [vmem:[%s2196_s2] sm:$0xf] }
 0x4a3   : > { %1715 = vmatprep.subr.bf16.mxu1 %v1146_v42 }
 0x4a6   : > { %1716 = vmatpush3.bf16.msra.mxu1 %v1146_v42  ;;  %v1333_v42 = vsel %vm454_vm0, %v1321_v40, 0 }
 0x4a7   : > { %1717 = vmatprep.subr.bf16.mxu1 %v1145_v43 }
 0x4aa   : > { %1718 = vmatpush3.bf16.msra.mxu1 %v1145_v43 }
 0x4ab   : > { %1719 = vmatprep.subr.bf16.mxu1 %v1144_v44 }
 0x4ae   : > { %1720 = vmatpush3.bf16.msra.mxu1 %v1144_v44 }
 0x4af   : > { %1721 = vmatprep.subr.bf16.mxu1 %v1143_v45 }
 0x4b2   : > { %1722 = vmatpush3.bf16.msra.mxu1 %v1143_v45 }
 0x4b5   : > { %1724 = vmatmul.mubr.bf16.vlgmr.msra.gmra.mxu1 %v2041_v53 }
 0x4b6   : > { %1727 = vmatprep.mubr.bf16.mxu1 %v2046_v54 }
 0x4bd   : > { %1728 = vmatmul.mubr.bf16.gmra.mxu1 %v2053_v55 }
 0x4be   : > { %1731 = vmatprep.mubr.bf16.mxu1 %v2058_v56 }
 0x4c5   : > { %1732 = vmatmul.mubr.bf16.gmra.mxu1 %v2065_v57 }
 0x4c6   : > { %1735 = vmatprep.mubr.bf16.mxu1 %v2070_v58 }
 0x4cd   : > { %1736 = vmatmul.mubr.bf16.gmra.mxu1 %v2077_v59 }
 0x575   : > { %v1725_v53 = vpop.f32.mrf.mxu1 }
 0x576   : > { %v1201_v31 = vadd.f32 %v1725_v53, %v1493_v60 }
 0x577   : > { %v1192_v47 = vpop.f32.mrf.mxu1 }
 0x578   : > { %v1257_v35 = vmax.f32 %v1201_v31, 0.0  ;;  %v1193_v36 = vadd.f32 %v1493_v60, %v1192_v47 }
 0x579   : > { %v1726_v54 = vpop.f32.mrf.mxu1 }
 0x57a   : > { %v1204_v28 = vadd.f32 %v1726_v54, %v1493_v60  ;;  %v1255_v38 = vmax.f32 %v1193_v36, 0.0  ;;  %v1494_v54 = vld [vmem:[%s2204_s10] ss:$0 sm:$0xff] }
 0x57b   : > { %v1195_v48 = vpop.f32.mrf.mxu1 }
 0x57c   : > { %v1258_v24 = vmax.f32 %v1204_v28, 0.0  ;;  %v1196_v33 = vadd.f32 %v1493_v60, %v1195_v48 }
 0x57d   : > { %v1729_v55 = vpop.f32.mrf.mxu1 }
 0x57e   : > { %v1217_v19 = vadd.f32 %v1729_v55, %v1493_v60  ;;  %v1273_v37 = vpack.c.bf16 %v1258_v24, %v1257_v35  ;;  %v1256_v26 = vmax.f32 %v1196_v33, 0.0 }
 0x57f   : > { %v1208_v49 = vpop.f32.mrf.mxu1 }
 0x580   : > { %v1261_v25 = vmax.f32 %v1217_v19, 0.0  ;;  %v1209_v27 = vadd.f32 %v1493_v60, %v1208_v49  ;;  %v1272_v39 = vpack.c.bf16 %v1256_v26, %v1255_v38 }
 0x581   : > { %v1730_v56 = vpop.f32.mrf.mxu1 }
 0x582   : > { %v1220_v16 = vadd.f32 %v1730_v56, %v1493_v60  ;;  %v1259_v32 = vmax.f32 %v1209_v27, 0.0 }
 0x583   : > { %v1211_v50 = vpop.f32.mrf.mxu1 }
 0x584   : > { %v1262_v21 = vmax.f32 %v1220_v16, 0.0  ;;  %v1212_v22 = vadd.f32 %v1493_v60, %v1211_v50 }
 0x585   : > { %v1733_v57 = vpop.f32.mrf.mxu1 }
 0x586   : > { %v1233_v9 = vadd.f32 %v1733_v57, %v1493_v60  ;;  %v1275_v29 = vpack.c.bf16 %v1262_v21, %v1261_v25  ;;  %v1260_v30 = vmax.f32 %v1212_v22, 0.0 }
 0x587   : > { %v1224_v51 = vpop.f32.mrf.mxu1 }
 0x588   : > { %v1265_v14 = vmax.f32 %v1233_v9, 0.0  ;;  %v1225_v15 = vadd.f32 %v1493_v60, %v1224_v51  ;;  %v1274_v34 = vpack.c.bf16 %v1260_v30, %v1259_v32 }
 0x589   : > { %v1734_v58 = vpop.f32.mrf.mxu1 }
 0x58a   : > { %v1236_v6 = vadd.f32 %v1734_v58, %v1493_v60  ;;  %v1263_v20 = vmax.f32 %v1225_v15, 0.0 }
 0x58b   : > { %v1227_v52 = vpop.f32.mrf.mxu1 }
 0x58c   : > { %v1266_v11 = vmax.f32 %v1236_v6, 0.0  ;;  %v1228_v12 = vadd.f32 %v1493_v60, %v1227_v52 }
 0x58d   : > { %v1737_v59 = vpop.f32.mrf.mxu1 }
 0x58e   : > { %v1249_v63 = vadd.f32 %v1737_v59, %v1493_v60  ;;  %v1277_v17 = vpack.c.bf16 %v1266_v11, %v1265_v14  ;;  %v1264_v18 = vmax.f32 %v1228_v12, 0.0 }
 0x58f   : > { %v1240_v61 = vpop.f32.mrf.mxu1 }
 0x590   : > { %v1269_v2 = vmax.f32 %v1249_v63, 0.0  ;;  %v1241_v3 = vadd.f32 %v1493_v60, %v1240_v61  ;;  %v1276_v23 = vpack.c.bf16 %v1264_v18, %v1263_v20 }
 0x591   : > { %v1738_v0 = vpop.f32.mrf.mxu1 }
 0x592   : > { %v1252_v1 = vadd.f32 %v1738_v0, %v1493_v60  ;;  %v1267_v10 = vmax.f32 %v1241_v3, 0.0 }
 0x593   : > { %v1243_v62 = vpop.f32.mrf.mxu1 }
 0x594   : > { %v1270_v4 = vmax.f32 %v1252_v1, 0.0  ;;  %v1244_v5 = vadd.f32 %v1493_v60, %v1243_v62 }
 0x596   : > { %v1279_v7 = vpack.c.bf16 %v1270_v4, %v1269_v2  ;;  %v1268_v8 = vmax.f32 %v1244_v5, 0.0 }
 0x598   : > { %1740 = vmatpush3.bf16.msra.mxu0 %v1279_v7  ;;  %v1278_v13 = vpack.c.bf16 %v1268_v8, %v1267_v10 }
 0x599   : > { %1741 = vmatprep.subr.bf16.mxu0 %v1880_v46 }
 0x59c   : > { %1742 = vmatpush3.bf16.msra.mxu0 %v1278_v13 }
 0x59d   : > { %1743 = vmatprep.subr.bf16.mxu0 %v1880_v46 }
 0x5a0   : > { %1744 = vmatpush3.bf16.msra.mxu0 %v1277_v17 }
 0x5a1   : > { %1745 = vmatprep.subr.bf16.mxu0 %v1880_v46 }
 0x5a4   : > { %1746 = vmatpush3.bf16.msra.mxu0 %v1276_v23 }
 0x5a5   : > { %1747 = vmatprep.subr.bf16.mxu0 %v1880_v46 }
 0x5a8   : > { %1748 = vmatpush3.bf16.msra.mxu0 %v1275_v29 }
 0x5a9   : > { %1749 = vmatprep.subr.bf16.mxu0 %v1880_v46 }
 0x5ac   : > { %1750 = vmatpush3.bf16.msra.mxu0 %v1274_v34 }
 0x5ad   : > { %1751 = vmatprep.subr.bf16.mxu0 %v1880_v46 }
 0x5b0   : > { %1752 = vmatpush3.bf16.msra.mxu0 %v1273_v37 }
 0x5b1   : > { %1753 = vmatprep.subr.bf16.mxu0 %v1880_v46 }
 0x5b4   : > { %1754 = vmatpush3.bf16.msra.mxu0 %v1272_v39 }
 0x5b5   : > { %1759 = vmatprep.subr.bf16.mxu0 %v1880_v46 }
 0x5b7   : > { %1756 = vmatmul.mubr.bf16.vlgmr.msra.gmra.mxu0 %v1271_v41 }
 0x5b8   : > { %1760 = vmatpush3.bf16.msra.mxu0 %v1333_v42  ;;  %1761 = vmatprep.mubr.msk.bf16.mxu0 %vm1881_vm4, %v1880_v46 }
 0x677   : > { %v1314_v43 = vpop.f32.mrf.mxu0 }
 0x678   : > { %v1320_v44 = vpack.c.bf16 %v1314_v43, %v1314_v43 }
 0x679   : > { %v1757_v45 = vpop.f32.mrf.mxu0 }
 0x67a   : > { %1762 = vmatmul.mubr.msk.bf16.vlgmr.msra.gmra.mxu0 %vm429_vm1, %v1320_v44 }
 0x67b   : > { %v1317_v53 = vpop.f32.mrf.mxu0 }
 0x67d   : > { %v1758_v47 = vpop.f32.mrf.mxu0 }
 0x73a   : > { %v1369_v48 = vpop.f32.mrf.mxu0 }
 0x73b   : > { %v1370_v55 = vadd.f32 %v1494_v54, %v1369_v48 }
 0x73c   : > { %v1763_v46 = vpop.f32.mrf.mxu0 }
 0x73d   : > { %1375 = vst [vmem:[%s380_s14] sm:$0xff] %v1370_v55 }
 0x73e   : > { %v1372_v49 = vpop.f32.mrf.mxu0 }
 0x73f   : > { %1831 = shalt.err (!%p1828_p3)
}
 0x740   : > { %s1832_s13 = scalar_lea.hbm %s2153_s24, 128  ;;  %s1836_s22 = scalar_lea.hbm %s2205_s11, 256 }
 0x741   : > { %p1833_p4 = scmp.ne.s32.totalorder %s2153_s24, %s1832_s13  ;;  %p1837_p9 = scmp.lt.s32.totalorder %s2153_s24, %s2205_s11 }
 0x742   : > { %p1838_p10 = scmp.lt.s32.totalorder %s1836_s22, %s1832_s13 }
 0x743   : > { %p1834_p7 = pnand %p1833_p4, %p1981_p5 }
 0x744   : > { %p1839_p11 = por %p1838_p10, %p1837_p9 }
 0x745   : > { %p1835_p8 = pneg %p1834_p7 }
 0x747   : > { %p1840_p12 = pnand %p1839_p11, %p1835_p8 }
 0x749   : > { %1843 = shalt.err (!%p1840_p12)
}
 0x74a   : > { %1766 = dma.vmem_to_hbm [thread:$0]  (%p1981_p5), %s2155_s15, 128, %s2153_s24, %s1377_s30   ;;  %v1764_v56 = vpop.f32.mrf.mxu0 }
 0x74b PF: > { %p1772_p13 = scmp.ge.s32.totalorder %s1878_s20, 2  ;;  %s1402_s12 = sand.u32 1, %s1866_s17  }
 0x74c   : > { %s1403_s0 = scalar_lea.sflag [#allocation3], %s1402_s12 }
 0x74d   : > { %p1769_p0 = pnand %p1772_p13, %p1985_p6 }
 0x74f   : > { %p1770_p1 = pneg %p1769_p0 }
 0x751   : > { %1861 = dma.done.wait (%p1770_p1), %s1403_s0, 128  }
 0x752   : > { %1863 = vsyncadd (%p1770_p1), %s1403_s0, 4294967168  ;;  %p21_p2 = scmp.ge.s32.totalorder %s1968_s23, 4   ;;  %s2210_s17 = smov %s1870_s18 }
 0x753   : > { %s2211_s18 = smov %s1874_s19  ;;  %s2212_s19 = smov %s1979_s26 }
 0x754   : > { %s2213_s20 = smov %s1968_s23  ;;  %23 = sbr.rel (!%p21_p2) target bundleno = 5 (0x5), region = 99 }
 0x759   :  { %1408 = vsyncpa [#allocation3], 1 }
 0x75a   :  { %1410 = vsyncpa [#allocation3 + $0x1], 1 }

</bundles_post_ra>
